<compile_context>
chip_gen: v7x
topology: tpu7x:2x2x1
jax: 0.10.0
libtpu: 0.0.40
codegen_flags: <defaults>
</compile_context>

<pallas_src>
import functools

import jax
import jax.numpy as jnp
from jax.experimental import pallas as pl
from jax.experimental.pallas import tpu as pltpu


def _round_up(x, m):
    return (x + m - 1) // m * m


def mlp_kernel(x_ref, w1_ref, b1_ref, w2_ref, b2_ref, o_ref, *, matmul_dtype):
    # Layer 1: (tm, in) @ (in, hid), f32 accumulation on the MXU.
    h = jnp.dot(
        x_ref[...].astype(matmul_dtype),
        w1_ref[...].astype(matmul_dtype),
        preferred_element_type=jnp.float32,
    )
    # Bias + ReLU in f32 on the VPU (v5e has no bf16 VPU path; this is cheap).
    h = jnp.maximum(h + b1_ref[...].astype(jnp.float32), 0.0)
    # Layer 2: (tm, hid) @ (hid, out).
    y = jnp.dot(
        h.astype(matmul_dtype),
        w2_ref[...].astype(matmul_dtype),
        preferred_element_type=jnp.float32,
    )
    o_ref[...] = (y + b2_ref[...].astype(jnp.float32)).astype(o_ref.dtype)


def prepare_params(W1, b1, W2, b2, dtype=None):
    """One-time layout prep (call once, outside the per-step hot path).

    PyTorch layout (hidden,in)/(out,hidden) -> kernel layout (in,hidden) /
    (hidden,out); biases become (1, n) rows. No padding: the kernel's
    BlockSpecs use full-array blocks for every feature axis, which is exact
    and avoids inflating HBM traffic. Pass dtype=jnp.bfloat16 to also store
    weights in bf16 (halves weight DMA) when using the bf16 matmul path.
    """
    if dtype is None:
        dtype = W1.dtype
    w1_t = W1.T.astype(dtype)
    w2_t = W2.T.astype(dtype)
    b1_r = b1.reshape(1, -1).astype(jnp.float32)
    b2_r = b2.reshape(1, -1).astype(jnp.float32)
    return w1_t, b1_r, w2_t, b2_r


def _choose_block_m(batch):
    """Small batches -> one grid step; large batches -> 512-row tiles."""
    b8 = _round_up(batch, 8)
    if b8 <= 2048:
        return b8          # single step: zero per-step overhead, no megacore split
    return 512             # ~85% HBM roofline, >=2 steps per TensorCore on v7x


@functools.partial(jax.jit, static_argnames=("block_m", "matmul_dtype"))
def mlp_forward(x, w1_t, b1_r, w2_t, b2_r, *, block_m=None,
                matmul_dtype=jnp.float32):
    """x: (B, input_dim); params already in `prepare_params` layout."""
    B, input_dim = x.shape
    in_d, hid_d = w1_t.shape
    out_d = w2_t.shape[1]
    assert in_d == input_dim, "weight/input dim mismatch"

    tm = _round_up(block_m, 8) if block_m is not None else _choose_block_m(B)
    B_p = _round_up(B, tm)
    if B_p != B:
        # Only the batch axis is ever padded (feature axes stay exact).
        x = jnp.pad(x, ((0, B_p - B), (0, 0)))

    n_steps = B_p // tm
    kernel = functools.partial(mlp_kernel, matmul_dtype=matmul_dtype)

    out = pl.pallas_call(
        kernel,
        out_shape=jax.ShapeDtypeStruct((B_p, out_d), x.dtype),
        grid=(n_steps,),
        in_specs=[
            # Activations: pipelined over batch tiles; feature dim = full array.
            pl.BlockSpec((tm, in_d), lambda i: (i, 0)),
            # Weights / biases: same block every step -> stay VMEM-resident.
            pl.BlockSpec((in_d, hid_d), lambda i: (0, 0)),
            pl.BlockSpec((1, hid_d), lambda i: (0, 0)),
            pl.BlockSpec((hid_d, out_d), lambda i: (0, 0)),
            pl.BlockSpec((1, out_d), lambda i: (0, 0)),
        ],
        # True-width output blocks: a few masked stores beat 8x HBM writeback
        # + a separate slice kernel at these output widths.
        out_specs=pl.BlockSpec((tm, out_d), lambda i: (i, 0)),
        compiler_params=pltpu.CompilerParams(
            dimension_semantics=("parallel",) if n_steps > 1 else ("arbitrary",),
        ),
    )(x, w1_t, b1_r, w2_t, b2_r)

    return out[:B] if B_p != B else out


def init_params(key, input_dim, hidden_dim, output_dim, dtype=jnp.float32):
    """Deterministic kaiming_normal_ (fan_in, relu gain sqrt(2)) like torch."""
    k1, k2 = jax.random.split(key)
    std1 = (2.0 / input_dim) ** 0.5    # fan_in = input_dim for W_1 (hidden, input)
    std2 = (2.0 / hidden_dim) ** 0.5   # fan_in = hidden_dim for W_2 (output, hidden)
    W1 = (jax.random.normal(k1, (hidden_dim, input_dim)) * std1).astype(dtype)
    b1 = jnp.zeros((hidden_dim,), dtype)
    W2 = (jax.random.normal(k2, (output_dim, hidden_dim)) * std2).astype(dtype)
    b2 = jnp.zeros((output_dim,), dtype)
    return W1, b1, W2, b2


if __name__ == "__main__":
    key = jax.random.PRNGKey(0)
    k_x, k_p = jax.random.split(key)

    # Small shapes consistent with the module; batch=12 also exercises the
    # batch-padding (12 -> 16 rows) and slice-back path.
    batch, input_dim, hidden_dim, output_dim = 12, 32, 64, 16
    x = jax.random.normal(k_x, (batch, input_dim), dtype=jnp.float32)
    W1, b1, W2, b2 = init_params(k_p, input_dim, hidden_dim, output_dim)

    # One-time parameter layout prep (hoisted out of the per-call hot path).
    w1_t, b1_r, w2_t, b2_r = jax.block_until_ready(
        prepare_params(W1, b1, W2, b2))

    # Default f32 matmul keeps the 1e-5 tolerance.
    # TODO(synk): on v6e/v7x pass matmul_dtype=jnp.bfloat16 (and bf16 weights
    # from prepare_params) once the problem is MXU-bound; relax tolerance.
    out = mlp_forward(x, w1_t, b1_r, w2_t, b2_r)
    out = jax.block_until_ready(out)

    # Cross-check against a plain-JAX reference of the PyTorch forward.
    ref = jnp.maximum(x @ W1.T + b1, 0.0) @ W2.T + b2
    assert out.shape == (batch, output_dim)
    assert jnp.allclose(out, ref, atol=1e-5, rtol=1e-5)

    print("KERNEL_OK")
</pallas_src>

<mosaic_0001>
module attributes {stable_mosaic.version = 11 : i64} {
  func.func @mlp_kernel(%arg0: i32, %arg1: memref<16x32xf32, #tpu.memory_space<vmem>>, %arg2: memref<32x64xf32, #tpu.memory_space<vmem>>, %arg3: memref<1x64xf32, #tpu.memory_space<vmem>>, %arg4: memref<64x16xf32, #tpu.memory_space<vmem>>, %arg5: memref<1x16xf32, #tpu.memory_space<vmem>>, %arg6: memref<16x16xf32, #tpu.memory_space<vmem>>) attributes {dimension_semantics = [#tpu.dimension_semantics<arbitrary>], iteration_bounds = array<i64: 1>, scalar_prefetch = 0 : i64, scratch_operands = 0 : i64, tpu.core_type = #tpu.core_type<tc>, window_params = [{transform_indices = @transform_0, window_bounds = array<i64: 16, 32>}, {pipeline_mode = #tpu.pipeline_mode<synchronous>, transform_indices = @transform_1, window_bounds = array<i64: 32, 64>}, {pipeline_mode = #tpu.pipeline_mode<synchronous>, transform_indices = @transform_2, window_bounds = array<i64: 1, 64>}, {pipeline_mode = #tpu.pipeline_mode<synchronous>, transform_indices = @transform_3, window_bounds = array<i64: 64, 16>}, {pipeline_mode = #tpu.pipeline_mode<synchronous>, transform_indices = @transform_4, window_bounds = array<i64: 1, 16>}, {transform_indices = @transform_5, window_bounds = array<i64: 16, 16>}]} {
    %c0 = arith.constant 0 : index
    %c0_0 = arith.constant 0 : index
    %0 = vector.load %arg1[%c0, %c0_0] : memref<16x32xf32, #tpu.memory_space<vmem>>, vector<16x32xf32>
    %c0_1 = arith.constant 0 : index
    %c0_2 = arith.constant 0 : index
    %1 = vector.load %arg2[%c0_1, %c0_2] : memref<32x64xf32, #tpu.memory_space<vmem>>, vector<32x64xf32>
    %cst = arith.constant dense<0.000000e+00> : vector<16x64xf32>
    %2 = tpu.matmul %0, %1, %cst {dimension_numbers = #tpu.dot_dimension_numbers<[1], [0], [0], [1], [0, 0, 1, 1], [], []>} : vector<16x32xf32>, vector<32x64xf32>, vector<16x64xf32> -> vector<16x64xf32>
    %c0_3 = arith.constant 0 : index
    %c0_4 = arith.constant 0 : index
    %3 = vector.load %arg3[%c0_3, %c0_4] : memref<1x64xf32, #tpu.memory_space<vmem>>, vector<1x64xf32>
    %4 = vector.broadcast %3 : vector<1x64xf32> to vector<16x64xf32>
    %5 = arith.addf %2, %4 : vector<16x64xf32>
    %cst_5 = arith.constant 0.000000e+00 : f32
    %6 = vector.broadcast %cst_5 : f32 to vector<16x64xf32>
    %7 = arith.maximumf %5, %6 : vector<16x64xf32>
    %c0_6 = arith.constant 0 : index
    %c0_7 = arith.constant 0 : index
    %8 = vector.load %arg4[%c0_6, %c0_7] : memref<64x16xf32, #tpu.memory_space<vmem>>, vector<64x16xf32>
    %cst_8 = arith.constant dense<0.000000e+00> : vector<16x16xf32>
    %9 = tpu.matmul %7, %8, %cst_8 {dimension_numbers = #tpu.dot_dimension_numbers<[1], [0], [0], [1], [0, 0, 1, 1], [], []>} : vector<16x64xf32>, vector<64x16xf32>, vector<16x16xf32> -> vector<16x16xf32>
    %c0_9 = arith.constant 0 : index
    %c0_10 = arith.constant 0 : index
    %10 = vector.load %arg5[%c0_9, %c0_10] : memref<1x16xf32, #tpu.memory_space<vmem>>, vector<1x16xf32>
    %11 = vector.broadcast %10 : vector<1x16xf32> to vector<16x16xf32>
    %12 = arith.addf %9, %11 : vector<16x16xf32>
    %c0_11 = arith.constant 0 : index
    %c0_12 = arith.constant 0 : index
    %13 = vector.load %arg6[%c0_11, %c0_12] : memref<16x16xf32, #tpu.memory_space<vmem>>, vector<16x16xf32>
    tpu.vector_store %arg6[%c0_11, %c0_12], %12 {strides = array<i32>} : memref<16x16xf32, #tpu.memory_space<vmem>>, vector<16x16xf32>,
    return
  }
  func.func @transform_0(%arg0: i32) -> (i32, i32) {
    %c0_i32 = arith.constant 0 : i32
    %c0_i32_0 = arith.constant 0 : i32
    return %arg0, %c0_i32 : i32, i32
  }
  func.func @transform_1(%arg0: i32) -> (i32, i32) {
    %c0_i32 = arith.constant 0 : i32
    %c0_i32_0 = arith.constant 0 : i32
    %c0_i32_1 = arith.constant 0 : i32
    return %c0_i32, %c0_i32_0 : i32, i32
  }
  func.func @transform_2(%arg0: i32) -> (i32, i32) {
    %c0_i32 = arith.constant 0 : i32
    %c0_i32_0 = arith.constant 0 : i32
    %c0_i32_1 = arith.constant 0 : i32
    return %c0_i32, %c0_i32_0 : i32, i32
  }
  func.func @transform_3(%arg0: i32) -> (i32, i32) {
    %c0_i32 = arith.constant 0 : i32
    %c0_i32_0 = arith.constant 0 : i32
    %c0_i32_1 = arith.constant 0 : i32
    return %c0_i32, %c0_i32_0 : i32, i32
  }
  func.func @transform_4(%arg0: i32) -> (i32, i32) {
    %c0_i32 = arith.constant 0 : i32
    %c0_i32_0 = arith.constant 0 : i32
    %c0_i32_1 = arith.constant 0 : i32
    return %c0_i32, %c0_i32_0 : i32, i32
  }
  func.func @transform_5(%arg0: i32) -> (i32, i32) {
    %c0_i32 = arith.constant 0 : i32
    %c0_i32_0 = arith.constant 0 : i32
    return %arg0, %c0_i32 : i32, i32
  }
}

</mosaic_0001>

<bundles_post_ra>
// kernel: mlp_forward.1
= control target key start
LH: loop header
LB: loop body
LE: loop exit
PB: predicated region body
PF: predicated region fallthrough
CT: control target
= control target key end

     0   :  { %vm34_vm0 = vcmask 261120   ;;  %s432_s0 = inlined_call_operand.vmem [shape: f32[16,32], index: 0, kind: input, shape index: {}]   ;;  %s433_s1 = inlined_call_operand.vmem [shape: f32[32,64], index: 1, kind: input, shape index: {}]   ;;  %s434_s2 = inlined_call_operand.vmem [shape: f32[1,64], index: 2, kind: input, shape index: {}]   ;;  %s435_s3 = inlined_call_operand.vmem [shape: f32[64,16], index: 3, kind: input, shape index: {}]   ;;  %s436_s4 = inlined_call_operand.vmem [shape: f32[1,16], index: 4, kind: input, shape index: {}]   ;;  %s437_s5 = inlined_call_operand.hbm [shape: f32[16,16], index: 5, kind: output, shape index: {}]  }
   0x1   :  { %v23_v0 = vld [vmem:[%s433_s1] sm:$0xff]  ;;  %v24_v1 = vld [vmem:[%s433_s1 + $0x8] sm:$0xff]  ;;  %v25_v2 = vld [vmem:[%s433_s1 + $0x10] sm:$0xff] }
   0x2   :  { %v286_v3 = vpack.c.bf16 %v24_v1, %v23_v0  ;;  %v26_v4 = vld [vmem:[%s433_s1 + $0x18] sm:$0xff]  ;;  %v21_v5 = vld [vmem:[%s432_s0] sm:$0xff]  ;;  %v119_v8 = vld [vmem:[%s435_s3 + $0x8] sm:$0xff] }
   0x3   :  { %v290_v6 = vpack.c.bf16 %v26_v4, %v25_v2  ;;  %264 = vmatprep.mubr.msk.f32.mxu0 %vm34_vm0, %v21_v5  ;;  %v118_v7 = vld [vmem:[%s435_s3] sm:$0xff]  ;;  %v120_v9 = vld [vmem:[%s435_s3 + $0x10] sm:$0xff]  ;;  %v121_v11 = vld [vmem:[%s435_s3 + $0x18] sm:$0xff] }
   0x4   :  { %287 = vmatprep.subr.bf16.mxu0 %v286_v3  ;;  %v294_v10 = vpack.c.bf16 %v119_v8, %v118_v7  ;;  %v298_v12 = vpack.c.bf16 %v121_v11, %v120_v9  ;;  %v122_v13 = vld [vmem:[%s435_s3 + $0x20] sm:$0xff]  ;;  %v123_v14 = vld [vmem:[%s435_s3 + $0x28] sm:$0xff] }
   0x5   :  { %289 = vmatpush3.bf16.msra.mxu0 %v286_v3 }
   0x6   :  { %10 = vsyncpa [#allocation3], 0  ;;  %291 = vmatprep.subr.bf16.mxu0 %v290_v6  ;;  %295 = vmatprep.subr.bf16.mxu1 %v294_v10  ;;  %v302_v15 = vpack.c.bf16 %v123_v14, %v122_v13  ;;  %v22_v16 = vld [vmem:[%s432_s0 + $0x8] sm:$0xff]  ;;  %v124_v17 = vld [vmem:[%s435_s3 + $0x30] sm:$0xff]  ;;  %vm133_vm1 = vcmask 523264   ;;  %vm215_vm2 = vcmask 130048  }
   0x7   :  { %297 = vmatpush3.bf16.msra.mxu1 %v294_v10  ;;  %v125_v18 = vld [vmem:[%s435_s3 + $0x38] sm:$0xff]  ;;  %v234_v20 = vld [vmem:[%s434_s2] ss:$0 sm:$0xff]  ;;  %s337_s3 = smov [#allocation2]  }
   0x8   :  { %299 = vmatprep.subr.bf16.mxu1 %v298_v12  ;;  %v306_v19 = vpack.c.bf16 %v125_v18, %v124_v17  ;;  %v237_v27 = vld [vmem:[%s436_s4] ss:$0 sm:$0xff]  ;;  %s223_s23 = sshll.u32 %s337_s3, 4  ;;  %s224_s23 = int_to_ptr.vmem [resolvable:$true] %s223_s23 }
   0x9   :  { %293 = vmatpush3.bf16.msra.mxu0 %v290_v6  ;;  %s313_s2 = scalar_lea.vmem %s224_s23, 256  ;;  %p318_p1 = scmp.lt.s32.totalorder %s224_s23, %s224_s23 }
   0xa   :  { %p314_p0 = scmp.ne.s32.totalorder %s224_s23, %s313_s2  ;;  %p319_p2 = scmp.lt.s32.totalorder %s313_s2, %s313_s2 }
   0xb   :  { %301 = vmatpush3.bf16.msra.mxu1 %v298_v12 }
   0xc   :  { %265 = vmatmul.mubr.msk.f32.vlgmr.msra.gmra.mrb[0].mxu0 %vm34_vm0, %v22_v16  ;;  %303 = vmatprep.subr.bf16.mxu1 %v302_v15  ;;  %p320_p3 = por %p319_p2, %p318_p1 }
   0xe   :  { %p321_p4 = pnand %p320_p3, %p314_p0 }
   0xf   :  { %305 = vmatpush3.bf16.msra.mxu1 %v302_v15 }
  0x10   :  { %307 = vmatprep.subr.bf16.mxu1 %v306_v19 }
  0x13   :  { %309 = vmatpush3.bf16.msra.mxu1 %v306_v19 }
  0xdf   :  { %v266_v21 = vpop.f32.mrb[0].mxu0 }
  0xe0   :  { %v113_v22 = vadd.f32 %v266_v21, %v234_v20  ;;  %v107_v23 = vpop.f32.mrb[1].mxu0 }
  0xe1   :  { %v108_v24 = vadd.f32 %v234_v20, %v107_v23 }
  0xe2   :  { %v117_v26 = vmax.f32 %v113_v22, 0.0 }
  0xe3   :  { %v116_v25 = vmax.f32 %v108_v24, 0.0 }
  0xe5   :  { %283 = vmatprep.mubr.msk.f32.mxu1 %vm133_vm1, %v116_v25 }
  0xe6   :  { %284 = vmatmul.mubr.msk.f32.vlgmr.msra.gmra.mrb[0].mxu1 %vm133_vm1, %v117_v26 }
 0x1b9   :  { %v285_v28 = vpop.f32.mrb[0].mxu1 }
 0x1ba   :  { %v212_v29 = vadd.f32 %v285_v28, %v237_v27  ;;  %v206_v30 = vpop.f32.mrb[1].mxu1 }
 0x1bb   :  { %v207_v31 = vadd.f32 %v237_v27, %v206_v30 }
 0x1bc   :  { %217 = vst.msk [vmem:[#allocation2 + $0x8] sm:$0xff] %vm215_vm2, %v212_v29 }
 0x1bd   :  { %216 = vst.msk [vmem:[#allocation2] sm:$0xff] %vm215_vm2, %v207_v31 }
 0x1be   :  { %324 = shalt.err (!%p321_p4)
}
 0x1bf   :  { %s325_s4 = scalar_lea.hbm %s437_s5, 256 }
 0x1c0   :  { %p326_p5 = scmp.ne.s32.totalorder %s437_s5, %s325_s4  ;;  %p329_p6 = scmp.lt.u32.totalorder %s325_s4, %s437_s5 }
 0x1c2   :  { %p331_p7 = pnand %p329_p6, %p326_p5 }
 0x1c4   :  { %334 = shalt.err (!%p331_p7)
}
 0x1c5   :  { %s338_s30 = smov 128   ;;  %s339_s6 = smov 8  }
 0x1c6   :  { %229 = dma.vmem_to_hbm [thread:$0]  %s224_s23, 256, %s437_s5, [#allocation3], %s338_s30, %s338_s30, %s339_s6  }
 0x1c7   :  { %335 = dma.done.wait [#allocation3], 256  }
 0x1c8   :  { %336 = vsyncadd [#allocation3], 4294967040 }
 0x1c9   :  { %233 = vsyncpa [#allocation3], 1 }

</bundles_post_ra>
